<compile_context>
chip_gen: v6e
topology: v6e:2x2x1
jax: 0.10.0
libtpu: 0.0.40
codegen_flags: <defaults>
</compile_context>

<pallas_src>
import functools

import jax
import jax.numpy as jnp
from jax import lax
from jax.experimental import pallas as pl
from jax.experimental.pallas import tpu as pltpu


def _round_up(x, m):
    return (x + m - 1) // m * m


def _ntxent_kernel(zc_ref, zr_ref, zp_ref, out_ref, *,
                   temp, n, n_pad, tm, use_bf16):
    """One row-tile of the NT-Xent loss.

    zc_ref : [2*n_pad, d_pad]  raw concatenated embeddings (columns, resident)
    zr_ref : [tm, d_pad]       raw rows of this tile
    zp_ref : [tm, d_pad]       raw positive-partner rows of this tile
    out_ref: [tm, 1]           per-row loss (0 for padded rows)
    """
    f32 = jnp.float32
    inv_t = 1.0 / temp

    zc = zc_ref[...].astype(f32)
    zr = zr_ref[...].astype(f32)
    zp = zp_ref[...].astype(f32)

    # L2-normalize rows (eps matches torch.nn.functional.normalize clamp).
    # Reciprocal on the tiny [rows, 1] vector, then a broadcast multiply.
    c_inv = 1.0 / jnp.maximum(jnp.sqrt(jnp.sum(zc * zc, axis=1, keepdims=True)), 1e-12)
    r_inv = 1.0 / jnp.maximum(jnp.sqrt(jnp.sum(zr * zr, axis=1, keepdims=True)), 1e-12)
    zcn = zc * c_inv
    zrn = zr * r_inv

    if use_bf16:  # optional: ~2-4x MXU throughput, slightly looser numerics
        lhs, rhs = zrn.astype(jnp.bfloat16), zcn.astype(jnp.bfloat16)
    else:
        lhs, rhs = zrn, zcn

    # Contract on the feature dim of both operands -> no [D, 2N] transpose.
    sim = lax.dot_general(
        lhs, rhs,
        dimension_numbers=(((1,), (1,)), ((), ())),
        preferred_element_type=jnp.float32,
    ) * inv_t                                                   # [tm, 2*n_pad]

    exps = jnp.exp(sim)
    if n != n_pad:
        # Each half was zero-padded from n to n_pad rows; drop padded columns.
        col = lax.broadcasted_iota(jnp.int32, (1, 2 * n_pad), 1)
        col_valid = (col % n_pad) < n
        exps = jnp.where(col_valid, exps, 0.0)
    row_sum = jnp.sum(exps, axis=1, keepdims=True)              # [tm, 1]

    # Diagonal correction replaces the full [2N,2N] ~eye mask. Using the
    # per-row self dot (not the constant 1/temp) keeps zero-norm rows exact.
    self_sim = jnp.sum(zrn * zrn, axis=1, keepdims=True) * inv_t
    denom = row_sum - jnp.exp(self_sim)

    # Positive term uses the *raw* (un-normalized) embeddings, exactly like
    # the PyTorch reference; log-domain form avoids exp overflow entirely.
    pos_logit = jnp.sum(zr * zp, axis=1, keepdims=True) * inv_t

    loss = jnp.log(denom) - pos_logit                           # [tm, 1]

    if n != n_pad:
        i = pl.program_id(0)
        local = lax.broadcasted_iota(jnp.int32, (tm, 1), 0)
        row_valid = ((i * tm + local) % n_pad) < n
        loss = jnp.where(row_valid, loss, 0.0)

    out_ref[...] = loss


def ntxent_loss(z_i, z_j, temp=0.5, use_bf16_matmul=False):
    """NT-Xent loss. z_i, z_j: [N, D]. Returns scalar f32."""
    n, d = z_i.shape
    assert z_j.shape == (n, d)

    # Tiling: lane-align D to 128; row tiles of 128 for larger batches
    # (multiples of 128 feed the MXU on v5e/v6e/v7x), a single tile per half
    # for tiny batches (avoids padded columns entirely).
    d_pad = _round_up(max(d, 1), 128)
    if 2 * n >= 256:
        tm = 128
    else:
        tm = _round_up(max(n, 1), 8)
    n_pad = _round_up(n, tm)
    two_n_pad = 2 * n_pad
    num_tiles = two_n_pad // tm          # even; tiles never straddle the zi/zj halves
    half_tiles = num_tiles // 2

    f32 = jnp.float32
    zi_p = jnp.zeros((n_pad, d_pad), f32).at[:n, :d].set(z_i.astype(f32))
    zj_p = jnp.zeros((n_pad, d_pad), f32).at[:n, :d].set(z_j.astype(f32))
    z = jnp.concatenate([zi_p, zj_p], axis=0)        # [2*n_pad, d_pad]

    kernel = functools.partial(
        _ntxent_kernel, temp=float(temp), n=n, n_pad=n_pad, tm=tm,
        use_bf16=use_bf16_matmul)

    # VMEM budget: resident column block (+ normalized copy), double-buffered
    # row / partner tiles, and the [tm, 2*n_pad] sim / exp strips.
    est_bytes = 4 * (3 * two_n_pad * d_pad
                     + 6 * tm * d_pad
                     + 3 * tm * two_n_pad
                     + 8 * tm)
    vmem_limit = int(min(max(32 * 1024 * 1024, 2 * est_bytes),
                         48 * 1024 * 1024))           # stay under v7x's 64 MiB

    cost = pl.CostEstimate(
        flops=2 * two_n_pad * two_n_pad * d_pad + 8 * two_n_pad * d_pad,
        transcendentals=two_n_pad * two_n_pad + 4 * two_n_pad,
        bytes_accessed=4 * (3 * two_n_pad * d_pad + two_n_pad),
    )

    per_row = pl.pallas_call(
        kernel,
        out_shape=jax.ShapeDtypeStruct((two_n_pad, 1), jnp.float32),
        grid=(num_tiles,),
        in_specs=[
            # Full concatenated embeddings (columns) -- constant index map, so
            # it stays resident in VMEM across grid steps (no re-DMA).
            pl.BlockSpec((two_n_pad, d_pad), lambda i: (0, 0)),
            # Raw rows of this tile.
            pl.BlockSpec((tm, d_pad), lambda i: (i, 0)),
            # Raw positive-partner rows (other half, same offset within half).
            pl.BlockSpec((tm, d_pad),
                         lambda i: ((i + half_tiles) % num_tiles, 0)),
        ],
        out_specs=pl.BlockSpec((tm, 1), lambda i: (i, 0)),
        compiler_params=pltpu.CompilerParams(
            dimension_semantics=("parallel",),
            vmem_limit_bytes=vmem_limit,
        ),
        cost_estimate=cost,
    )(z, z, z)

    # Tiny final reduction over per-row losses (padded rows contribute 0).
    return jnp.sum(per_row) / jnp.float32(2 * n)


def _ntxent_ref(z_i, z_j, temp=0.5):
    """Pure-JAX reference mirroring the PyTorch module."""
    n = z_i.shape[0]
    z = jnp.concatenate([z_i, z_j], axis=0)
    z = z / jnp.maximum(jnp.linalg.norm(z, axis=1, keepdims=True), 1e-12)
    sim = (z @ z.T) / temp
    mask = (~jnp.eye(2 * n, dtype=bool)).astype(jnp.float32)
    pos = jnp.exp(jnp.sum(z_i * z_j, axis=-1) / temp)
    pos = jnp.concatenate([pos, pos], axis=0)
    denom = jnp.sum(jnp.exp(sim) * mask, axis=1)
    return jnp.mean(-jnp.log(pos / denom))


if __name__ == "__main__":
    key = jax.random.PRNGKey(0)
    k1, k2 = jax.random.split(key)
    N, D = 8, 32
    z_i = jax.random.normal(k1, (N, D), dtype=jnp.float32) * 0.5
    z_j = jax.random.normal(k2, (N, D), dtype=jnp.float32) * 0.5

    loss = jax.block_until_ready(ntxent_loss(z_i, z_j, temp=0.5))
    ref = jax.block_until_ready(_ntxent_ref(z_i, z_j, temp=0.5))
    assert jnp.allclose(loss, ref, rtol=1e-4, atol=1e-4), (loss, ref)
    print("KERNEL_OK")
</pallas_src>

<mosaic_0001>
module attributes {stable_mosaic.version = 11 : i64} {
  func.func @_ntxent_kernel(%arg0: i32, %arg1: memref<16x128xf32, #tpu.memory_space<vmem>>, %arg2: memref<8x128xf32, #tpu.memory_space<vmem>>, %arg3: memref<8x128xf32, #tpu.memory_space<vmem>>, %arg4: memref<8x1xf32, #tpu.memory_space<vmem>>) attributes {dimension_semantics = [#tpu.dimension_semantics<parallel>], iteration_bounds = array<i64: 2>, scalar_prefetch = 0 : i64, scratch_operands = 0 : i64, tpu.core_type = #tpu.core_type<tc>, window_params = [{pipeline_mode = #tpu.pipeline_mode<synchronous>, transform_indices = @transform_0, window_bounds = array<i64: 16, 128>}, {transform_indices = @transform_1, window_bounds = array<i64: 8, 128>}, {transform_indices = @transform_2, window_bounds = array<i64: 8, 128>}, {transform_indices = @transform_3, window_bounds = array<i64: 8, 1>}]} {
    %c0 = arith.constant 0 : index
    %c0_0 = arith.constant 0 : index
    %0 = vector.load %arg1[%c0, %c0_0] : memref<16x128xf32, #tpu.memory_space<vmem>>, vector<16x128xf32>
    %c0_1 = arith.constant 0 : index
    %c0_2 = arith.constant 0 : index
    %1 = vector.load %arg2[%c0_1, %c0_2] : memref<8x128xf32, #tpu.memory_space<vmem>>, vector<8x128xf32>
    %c0_3 = arith.constant 0 : index
    %c0_4 = arith.constant 0 : index
    %2 = vector.load %arg3[%c0_3, %c0_4] : memref<8x128xf32, #tpu.memory_space<vmem>>, vector<8x128xf32>
    %3 = arith.mulf %0, %0 : vector<16x128xf32>
    %cst = arith.constant dense<0.000000e+00> : vector<16xf32>
    %4 = vector.multi_reduction <add>, %3, %cst [1] : vector<16x128xf32> to vector<16xf32>
    %5 = vector.shape_cast %4 : vector<16xf32> to vector<16x1xf32>
    %6 = math.sqrt %5 : vector<16x1xf32>
    %cst_5 = arith.constant 9.99999996E-13 : f32
    %7 = vector.broadcast %cst_5 : f32 to vector<16x1xf32>
    %8 = arith.maximumf %6, %7 : vector<16x1xf32>
    %cst_6 = arith.constant 1.000000e+00 : f32
    %9 = vector.broadcast %cst_6 : f32 to vector<16x1xf32>
    %10 = arith.divf %9, %8 : vector<16x1xf32>
    %11 = arith.mulf %1, %1 : vector<8x128xf32>
    %cst_7 = arith.constant dense<0.000000e+00> : vector<8xf32>
    %12 = vector.multi_reduction <add>, %11, %cst_7 [1] : vector<8x128xf32> to vector<8xf32>
    %13 = vector.shape_cast %12 : vector<8xf32> to vector<8x1xf32>
    %14 = math.sqrt %13 : vector<8x1xf32>
    %cst_8 = arith.constant 9.99999996E-13 : f32
    %15 = vector.broadcast %cst_8 : f32 to vector<8x1xf32>
    %16 = arith.maximumf %14, %15 : vector<8x1xf32>
    %cst_9 = arith.constant 1.000000e+00 : f32
    %17 = vector.broadcast %cst_9 : f32 to vector<8x1xf32>
    %18 = arith.divf %17, %16 : vector<8x1xf32>
    %19 = vector.broadcast %10 : vector<16x1xf32> to vector<16x128xf32>
    %20 = arith.mulf %0, %19 : vector<16x128xf32>
    %21 = vector.broadcast %18 : vector<8x1xf32> to vector<8x128xf32>
    %22 = arith.mulf %1, %21 : vector<8x128xf32>
    %cst_10 = arith.constant dense<0.000000e+00> : vector<8x16xf32>
    %23 = tpu.matmul %22, %20, %cst_10 {dimension_numbers = #tpu.dot_dimension_numbers<[1], [1], [0], [0], [0, 0, 1, 0], [], []>} : vector<8x128xf32>, vector<16x128xf32>, vector<8x16xf32> -> vector<8x16xf32>
    %cst_11 = arith.constant 2.000000e+00 : f32
    %24 = vector.broadcast %cst_11 : f32 to vector<8x16xf32>
    %25 = arith.mulf %23, %24 : vector<8x16xf32>
    %26 = math.exp %25 : vector<8x16xf32>
    %cst_12 = arith.constant dense<0.000000e+00> : vector<8xf32>
    %27 = vector.multi_reduction <add>, %26, %cst_12 [1] : vector<8x16xf32> to vector<8xf32>
    %28 = vector.shape_cast %27 : vector<8xf32> to vector<8x1xf32>
    %29 = arith.mulf %22, %22 : vector<8x128xf32>
    %cst_13 = arith.constant dense<0.000000e+00> : vector<8xf32>
    %30 = vector.multi_reduction <add>, %29, %cst_13 [1] : vector<8x128xf32> to vector<8xf32>
    %31 = vector.shape_cast %30 : vector<8xf32> to vector<8x1xf32>
    %cst_14 = arith.constant 2.000000e+00 : f32
    %32 = vector.broadcast %cst_14 : f32 to vector<8x1xf32>
    %33 = arith.mulf %31, %32 : vector<8x1xf32>
    %34 = math.exp %33 : vector<8x1xf32>
    %35 = arith.subf %28, %34 : vector<8x1xf32>
    %36 = arith.mulf %1, %2 : vector<8x128xf32>
    %cst_15 = arith.constant dense<0.000000e+00> : vector<8xf32>
    %37 = vector.multi_reduction <add>, %36, %cst_15 [1] : vector<8x128xf32> to vector<8xf32>
    %38 = vector.shape_cast %37 : vector<8xf32> to vector<8x1xf32>
    %cst_16 = arith.constant 2.000000e+00 : f32
    %39 = vector.broadcast %cst_16 : f32 to vector<8x1xf32>
    %40 = arith.mulf %38, %39 : vector<8x1xf32>
    %41 = math.log %35 : vector<8x1xf32>
    %42 = arith.subf %41, %40 : vector<8x1xf32>
    %c0_17 = arith.constant 0 : index
    %c0_18 = arith.constant 0 : index
    %43 = vector.load %arg4[%c0_17, %c0_18] : memref<8x1xf32, #tpu.memory_space<vmem>>, vector<8x1xf32>
    tpu.vector_store %arg4[%c0_17, %c0_18], %42 {strides = array<i32>} : memref<8x1xf32, #tpu.memory_space<vmem>>, vector<8x1xf32>,
    return
  }
  func.func @transform_0(%arg0: i32) -> (i32, i32) {
    %c0_i32 = arith.constant 0 : i32
    %c0_i32_0 = arith.constant 0 : i32
    %c0_i32_1 = arith.constant 0 : i32
    return %c0_i32, %c0_i32_0 : i32, i32
  }
  func.func @transform_1(%arg0: i32) -> (i32, i32) {
    %c0_i32 = arith.constant 0 : i32
    %c0_i32_0 = arith.constant 0 : i32
    return %arg0, %c0_i32 : i32, i32
  }
  func.func @transform_2(%arg0: i32) -> (i32, i32) {
    %c1_i32 = arith.constant 1 : i32
    %0 = arith.addi %arg0, %c1_i32 : i32
    %c2_i32 = arith.constant 2 : i32
    %c0_i32 = arith.constant 0 : i32
    %1 = arith.cmpi eq, %c2_i32, %c0_i32 : i32
    %c1_i32_0 = arith.constant 1 : i32
    %2 = arith.select %1, %c1_i32_0, %c2_i32 : i32
    %3 = arith.remsi %0, %2 : i32
    %c0_i32_1 = arith.constant 0 : i32
    %4 = arith.cmpi ne, %3, %c0_i32_1 : i32
    %c0_i32_2 = arith.constant 0 : i32
    %5 = arith.cmpi slt, %3, %c0_i32_2 : i32
    %c0_i32_3 = arith.constant 0 : i32
    %6 = arith.cmpi slt, %2, %c0_i32_3 : i32
    %7 = arith.xori %5, %6 : i1
    %8 = arith.andi %7, %4 : i1
    %9 = arith.addi %3, %2 : i32
    %10 = arith.select %8, %9, %3 : i32
    %c0_i32_4 = arith.constant 0 : i32
    %c0_i32_5 = arith.constant 0 : i32
    return %10, %c0_i32_4 : i32, i32
  }
  func.func @transform_3(%arg0: i32) -> (i32, i32) {
    %c0_i32 = arith.constant 0 : i32
    %c0_i32_0 = arith.constant 0 : i32
    return %arg0, %c0_i32 : i32, i32
  }
}

</mosaic_0001>

<bundles_post_ra>
// kernel: tpu_custom_call.1
= control target key start
LH: loop header
LB: loop body
LE: loop exit
PB: predicated region body
PF: predicated region fallthrough
CT: control target
= control target key end

     0   :  { %8 = vsyncpa [#allocation3], 0  ;;  %s1055_s0 = inlined_call_operand.hbm [shape: f32[16,128], index: 0, kind: input, shape index: {}]   ;;  %s1056_s1 = inlined_call_operand.hbm [shape: f32[16,128], index: 1, kind: input, shape index: {}]   ;;  %s1057_s2 = inlined_call_operand.hbm [shape: f32[16,128], index: 2, kind: input, shape index: {}]   ;;  %s1058_s3 = inlined_call_operand.vmem [shape: f32[16,1], index: 3, kind: output, shape index: {}]  }
   0x1   :  { %9 = vsyncpa [#allocation5], 0 }
   0x2   :  { %11 = vsyncpa [#allocation5 + $0x1], 0  ;;  %s835_s12 = smov 0   ;;  %s837_s13 = smov 0  }
   0x3   :  { %s839_s14 = smov 0   ;;  %s841_s15 = smov 0  }
   0x4   :  { %s843_s16 = smov 0   ;;  %s845_s17 = smov 0  }
   0x5   :  { %s847_s18 = smov 0  }
   0x6 LB: > { %s871_s19 = sadd.s32 1, %s806_s18   ;;  %s45_s20 = sadd.s32 1, %s802_s17  ;;  %s806_s18 = sphi %s847_s18, %s1088_s18   ;;  %s802_s17 = sphi %s845_s17, %s1087_s17   ;;  %s798_s16 = sphi %s843_s16, %s1086_s16   ;;  %s794_s15 = sphi %s841_s15, %s1085_s15   ;;  %s790_s14 = sphi %s839_s14, %s1084_s14   ;;  %s786_s13 = sphi %s837_s13, %s1083_s13   ;;  %s782_s12 = sphi %s835_s12, %s1082_s12  }
   0x7   : > { %s42_s21 = ssub.s32 %s806_s18, %s871_s19  ;;  %p52_p0 = scmp.ne.s32.totalorder %s802_s17, %s798_s16 }
   0x8   : > { %p43_p1 = scmp.eq.s32.totalorder %s42_s21, 0  ;;  %p1060_p2 = scmp.eq.s32.totalorder %s806_s18, 0 }
   0x9   : > { %p1059_p5 = scmp.lt.s32.totalorder %s806_s18, 2  ;;  %s173_s23 = sand.u32 1, %s806_s18  }
   0xa   : > { %s882_s22 = scalar_select %p43_p1, %s802_s17, %s45_s20  }
   0xb   : > { %p54_p4 = por %p1060_p2, %p52_p0  ;;  %s175_s24 = sand.u32 1, %s802_s17  }
   0xc   : > { %s533_s25 = sshll.u32 %s175_s24, 3  ;;  %s534_s26 = sshll.u32 %s806_s18, 7 }
   0xd   : > { %s893_s29 = scalar_lea.hbm %s1056_s1, %s534_s26  ;;  %s177_s30 = scalar_lea.vmem [#allocation4], %s533_s25 }
   0xe   : > { %s184_s4 = sshll.u32 %s177_s30, 4  ;;  %p899_p6 = pnand %p1059_p5, %p54_p4  ;;  %s895_s4 = int_to_ptr.vmem [resolvable:$true] %s184_s4 }
   0xf   : > { %s904_s6 = sadd.s32 4294967295, %s806_s18   ;;  %s908_s7 = scalar_lea.sflag [#allocation5], %s173_s23 }
  0x10   : > { %s658_s8 = scalar_lea.hbm %s893_s29, 128  ;;  %p660_p10 = pneg %p899_p6 }
  0x11   : > { %p659_p9 = scmp.ne.s32.totalorder %s893_s29, %s658_s8  ;;  %s663_s11 = scalar_lea.hbm %s1056_s1, 256 }
  0x12   : > { %p664_p13 = scmp.lt.s32.totalorder %s893_s29, %s1056_s1  ;;  %p665_p0 = scmp.lt.s32.totalorder %s663_s11, %s658_s8 }
  0x13   : > { %p661_p11 = pnand %p660_p10, %p659_p9 }
  0x14   : > { %p666_p1 = por %p665_p0, %p664_p13 }
  0x15   : > { %p662_p12 = pneg %p661_p11 }
  0x17   : > { %p667_p4 = pnand %p666_p1, %p662_p12 }
  0x19   : > { %670 = shalt.err (!%p667_p4)
}
  0x1a   : > { %s671_s23 = scalar_lea.vmem %s895_s4, 128  ;;  %s808_s24 = smov [#allocation4]  }
  0x1b   : > { %p672_p5 = scmp.ne.s32.totalorder %s895_s4, %s671_s23  ;;  %s676_s25 = sshll.u32 %s808_s24, 4  ;;  %s677_s25 = int_to_ptr.vmem [resolvable:$false] %s676_s25 }
  0x1c   : > { %s678_s26 = scalar_lea.vmem %s677_s25, 256  ;;  %p679_p11 = scmp.lt.s32.totalorder %s895_s4, %s677_s25 }
  0x1d   : > { %p674_p2 = pnand %p672_p5, %p660_p10  ;;  %p680_p7 = scmp.lt.s32.totalorder %s678_s26, %s671_s23 }
  0x1f   : > { %p675_p9 = pneg %p674_p2  ;;  %p681_p8 = por %p680_p7, %p679_p11 }
  0x21   : > { %p682_p3 = pnand %p681_p8, %p675_p9 }
  0x23   : > { %685 = shalt.err (!%p682_p3)
}
  0x24   : > { %572 = dma.hbm_to_vmem [thread:$0]  (!%p899_p6), %s893_s29, 128, %s895_s4, %s908_s7  }
  0x25   : > { %p1065_p2 = scmp.ne.s32.totalorder %s798_s16, %s794_s15  ;;  %p1066_p5 = scmp.eq.s32.totalorder %s904_s6, 0 }
  0x26   : > { %p147_p7 = scmp.lt.s32.totalorder %s806_s18, 3  ;;  %p1068_p3 = scmp.ge.s32.totalorder %s806_s18, 1 }
  0x27   : > { %p934_p10 = por %p1066_p5, %p1065_p2  ;;  %s809_s30 = smov [#allocation2]  }
  0x28   : > { %p941_p8 = pnand %p1068_p3, %p147_p7  ;;  %s159_s5 = sshll.u32 %s809_s30, 4  ;;  %s160_s5 = int_to_ptr.vmem [resolvable:$true] %s159_s5 }
  0x29   : > { %s1067_s27 = scalar_select %p934_p10, 1, 0 }
  0x2a   : > { %s1069_s28 = scalar_select %p941_p8, 1, 0 }
  0x2b   : > { %p565_p12 = pneg %p941_p8  ;;  %p1070_p13 = pmov %p1066_p5 }
  0x2c   : > { %s697_s15 = scalar_lea.vmem %s160_s5, 256  ;;  %p705_p11 = scmp.lt.s32.totalorder %s160_s5, %s160_s5 }
  0x2d   : > { %p566_p6 = pnand %p565_p12, %p1070_p13  ;;  %p698_p1 = scmp.ne.s32.totalorder %s160_s5, %s697_s15 }
  0x2e   : > { %p706_p2 = scmp.lt.s32.totalorder %s697_s15, %s697_s15 }
  0x2f   : > { %p688_p0 = pneg %p566_p6 }
  0x30   : > { %p707_p5 = por %p706_p2, %p705_p11 }
  0x31   : > { %p700_p4 = pnand %p698_p1, %p688_p0 }
  0x33   : > { %p701_p9 = pneg %p700_p4 }
  0x35   : > { %p708_p7 = pnand %p707_p5, %p701_p9 }
  0x37   : > { %711 = shalt.err (!%p708_p7)
}
  0x38   : > { %s810_s29 = smov 128   ;;  %s811_s4 = smov 8  }
  0x39   : > { %568 = dma.hbm_to_vmem [thread:$0]  (!%p566_p6), %s1055_s0, 256, %s160_s5, [#allocation3], %s810_s29, %s810_s29, %s811_s4  }
  0x3a   : > { %p69_p3 = scmp.lt.s32.totalorder %s871_s19, 0  ;;  %s70_s10 = ssub.s32 0, %s871_s19 }
  0x3b   : > { %s524_s11 = smin.u32 %s70_s10, %s871_s19  ;;  %s81_s20 = sadd.s32 1, %s871_s19 }
  0x3c   : > { %s72_s21 = sand.u32 1, %s524_s11   ;;  %p82_p12 = scmp.lt.s32.totalorder %s81_s20, 0 }
  0x3d   : > { %s73_s23 = ssub.s32 0, %s72_s21  ;;  %s83_s24 = ssub.s32 0, %s81_s20 }
  0x3e   : > { %s1090_s23 = smov (!%p69_p3, %s73_s23), %s72_s21  ;;  %s527_s25 = smin.u32 %s83_s24, %s81_s20 }
  0x3f   : > { %s97_s26 = sadd.s32 1, %s790_s14  ;;  %p526_p13 = scmp.lt.s32.totalorder %s1090_s23, 0 }
  0x40   : > { %s79_s30 = sadd.s32 2, %s1090_s23  ;;  %s85_s15 = sand.u32 1, %s527_s25  }
  0x41   : > { %p104_p6 = scmp.ne.s32.totalorder %s790_s14, %s786_s13  ;;  %s1092_s30 = smov (!%p526_p13, %s79_s30), %s1090_s23 }
  0x42   : > { %s86_s5 = ssub.s32 0, %s85_s15  ;;  %p1071_p0 = scmp.eq.s32.totalorder %s806_s18, 0 }
  0x43   : > { %s1094_s5 = smov (!%p82_p12, %s86_s5), %s85_s15  ;;  %p110_p4 = scmp.ne.s32.totalorder %s786_s13, %s782_s12 }
  0x44   : > { %p961_p1 = por %p104_p6, %p1071_p0  ;;  %s193_s4 = sand.u32 1, %s790_s14  }
  0x45   : > { %p529_p9 = scmp.lt.s32.totalorder %s1094_s5, 0  ;;  %s92_s8 = sadd.s32 2, %s1094_s5 }
  0x46   : > { %p1073_p11 = scmp.eq.s32.totalorder %s904_s6, 0  ;;  %s535_s10 = sshll.u32 %s193_s4, 3 }
  0x47   : > { %s1096_s8 = smov (!%p529_p9, %s92_s8), %s1094_s5  ;;  %s539_s11 = sshll.u32 %s1092_s30, 7 }
  0x48   : > { %p971_p2 = por %p110_p4, %p1073_p11  ;;  %s94_s21 = ssub.s32 %s1092_s30, %s1096_s8 }
  0x49   : > { %s978_s20 = scalar_lea.hbm %s1057_s2, %s539_s11  ;;  %p95_p5 = scmp.eq.s32.totalorder %s94_s21, 0 }
  0x4a   : > { %s1074_s9 = scalar_select %p971_p2, 1, 0 }
  0x4b   : > { %s195_s12 = scalar_lea.vmem [#allocation6], %s535_s10  ;;  %p1075_p7 = scmp.lt.s32.totalorder %s806_s18, 2 }
  0x4c   : > { %s215_s25 = sshll.u32 %s195_s12, 4  ;;  %s712_s5 = scalar_lea.hbm %s978_s20, 128  ;;  %s216_s25 = int_to_ptr.vmem [resolvable:$true] %s215_s25 }
  0x4d   : > { %p984_p3 = pnand %p1075_p7, %p961_p1  ;;  %p713_p12 = scmp.ne.s32.totalorder %s978_s20, %s712_s5 }
  0x4e   : > { %s989_s30 = scalar_select %p95_p5, %s790_s14, %s97_s26  }
  0x4f   : > { %p714_p13 = pneg %p984_p3  ;;  %s717_s10 = scalar_lea.hbm %s1057_s2, 256 }
  0x50   : > { %p718_p1 = scmp.lt.s32.totalorder %s978_s20, %s1057_s2  ;;  %p719_p4 = scmp.lt.s32.totalorder %s717_s10, %s712_s5 }
  0x51   : > { %p715_p6 = pnand %p714_p13, %p713_p12 }
  0x52   : > { %p720_p9 = por %p719_p4, %p718_p1 }
  0x53   : > { %p716_p0 = pneg %p715_p6 }
  0x55   : > { %p721_p11 = pnand %p720_p9, %p716_p0 }
  0x57   : > { %724 = shalt.err (!%p721_p11)
}
  0x58   : > { %s725_s18 = scalar_lea.vmem %s216_s25, 128  ;;  %s812_s26 = smov [#allocation6]  }
  0x59   : > { %p726_p5 = scmp.ne.s32.totalorder %s216_s25, %s725_s18  ;;  %s730_s21 = sshll.u32 %s812_s26, 4  ;;  %s731_s21 = int_to_ptr.vmem [resolvable:$false] %s730_s21 }
  0x5a   : > { %s732_s23 = scalar_lea.vmem %s731_s21, 256  ;;  %p733_p12 = scmp.lt.s32.totalorder %s216_s25, %s731_s21 }
  0x5b   : > { %p728_p7 = pnand %p726_p5, %p714_p13  ;;  %p734_p6 = scmp.lt.s32.totalorder %s732_s23, %s725_s18 }
  0x5d   : > { %p729_p2 = pneg %p728_p7  ;;  %p735_p10 = por %p734_p6, %p733_p12 }
  0x5f   : > { %p736_p8 = pnand %p735_p10, %p729_p2 }
  0x61   : > { %739 = shalt.err (!%p736_p8)
}
  0x62   : > { %575 = dma.hbm_to_vmem [thread:$0]  (!%p984_p3), %s978_s20, 128, %s216_s25, %s908_s7  }
  0x63   : > { %p1077_p0 = scmp.ne.s32.totalorder %s1069_s28, 0 }
  0x64   : > { %p1078_p13 = scmp.eq.s32.totalorder (!%p1077_p0), %s904_s6, 0 }
  0x65   : > { %224 = sbr.rel (%p1077_p0) target bundleno = 672 (0x2a0), region = 32 }
  0x6a   : > { %769 = dma.done.wait (%p1078_p13), [#allocation3], 256   ;;  %p1079_p1 = pmov %p1078_p13 }
  0x6b   : > { %s230_s24 = sand.u32 1, %s904_s6   ;;  %s232_s12 = sand.u32 1, %s798_s16  }
  0x6c   : > { %771 = vsyncadd (%p1079_p1), [#allocation3], 4294967040  ;;  %s542_s5 = sshll.u32 %s232_s12, 3  ;;  %s231_s4 = scalar_lea.sflag [#allocation5], %s230_s24 }
  0x6d   : > { %s234_s15 = scalar_lea.vmem [#allocation4], %s542_s5  ;;  %p1080_p10 = scmp.ne.s32.totalorder %s1067_s27, 0 }
  0x6f   : > { %773 = dma.done.wait (%p1080_p10), %s231_s4, 128  }
  0x70   : > { %775 = vsyncadd (%p1080_p10), %s231_s4, 4294967168  ;;  %s241_s7 = sand.u32 1, %s786_s13   ;;  %p1081_p8 = scmp.ne.s32.totalorder %s1074_s9, 0 }
  0x71   : > { %s1019_s28 = sshll.u32 %s241_s7, 3 }
  0x72   : > { %s243_s20 = scalar_lea.vmem [#allocation6], %s1019_s28 }
  0x73   : > { %777 = dma.done.wait (%p1081_p8), %s231_s4, 128  }
  0x74   : > { %779 = vsyncadd (%p1081_p8), %s231_s4, 4294967168  ;;  %v289_v0 = vld [vmem:[%s234_s15] sm:$0xff]  ;;  %v288_v1 = vld [vmem:[#allocation2 + $0x8] sm:$0xff]  ;;  %v813_v6 = vmov 0.0   ;;  %vm814_vm0 = vmmov 0   ;;  %vm406_vm7 = vcmask 130048  }
  0x75   : > { %v287_v2 = vld [vmem:[#allocation2] sm:$0xff]  ;;  %v317_v3 = vmul.f32 %v289_v0, %v289_v0  ;;  %v292_v4 = vmul.f32 %v288_v1, %v288_v1  ;;  %550 = vmatprep.subr.mxu0 %v813_v6  ;;  %554 = vmatprep.mubr.msk.f32.mxu0 %vm814_vm0, %v813_v6  ;;  %p283_p2 = scmp.lt.s32.totalorder %s904_s6, 1  ;;  %vm424_vm8 = vcmask 7168  }
  0x76   : > { %v291_v5 = vmul.f32 %v287_v2, %v287_v2  ;;  %v290_v35 = vld [vmem:[%s243_s20] sm:$0xff] }
  0x77   : > { %318 = vadd.xlane.f32.xlu1 %v317_v3  ;;  %295 = vadd.xlane.f32.xlu0 %v292_v4  ;;  %v417_v36 = vmul.f32 %v290_v35, %v289_v0  ;;  %s1098_s6 = smov (!%p283_p2, %s904_s6), 1 }
  0x78   : > { %s544_s27 = sshll.u32 %s1098_s6, 3 }
  0x79   : > { %s286_s8 = scalar_lea.vmem %s1058_s3, %s544_s27 }
  0x7b   : > { %293 = vadd.xlane.f32.xlu0 %v291_v5 }
 0x100   : > { %v319_v7 = vpop.xlane.xlu1 %318  ;;  %v296_v8 = vpop.xlane.xlu0 %295 }
 0x101   : > { %640 = vrsqrt.f32 %v319_v7  ;;  %vm322_vm1 = vcmp.eq.f32.partialorder %v319_v7, inf  ;;  %v325_v13 = vand.u32 2147483648, %v319_v7  ;;  %vm324_vm2 = vcmp.eq.f32.partialorder %v319_v7, 0.0 }
 0x102   : > { %642 = vrsqrt.f32 %v296_v8  ;;  %vm306_vm3 = vcmp.eq.f32.partialorder %v296_v8, inf  ;;  %v309_v16 = vand.u32 2147483648, %v296_v8  ;;  %vm308_vm4 = vcmp.eq.f32.partialorder %v296_v8, 0.0 }
 0x104   : > { %v294_v9 = vpop.xlane.xlu0 %293 }
 0x105   : > { %644 = vrsqrt.f32 %v294_v9  ;;  %vm299_vm5 = vcmp.eq.f32.partialorder %v294_v9, inf  ;;  %v302_v24 = vand.u32 2147483648, %v294_v9  ;;  %vm301_vm6 = vcmp.eq.f32.partialorder %v294_v9, 0.0 }
 0x10e   : > { %v641_v10 = vpop.eup %640 }
 0x10f   : > { %v643_v11 = vpop.eup %642  ;;  %v321_v12 = vmul.f32 %v641_v10, %v319_v7 }
 0x110   : > { %v305_v14 = vmul.f32 %v643_v11, %v296_v8 }
 0x111   : > { %v323_v15 = vsel %vm322_vm1, %v319_v7, %v321_v12 }
 0x112   : > { %v645_v17 = vpop.eup %644  ;;  %v326_v18 = vsel %vm324_vm2, %v325_v13, %v323_v15  ;;  %v307_v19 = vsel %vm306_vm3, %v296_v8, %v305_v14 }
 0x113   : > { %v327_v20 = vmax.f32 %v326_v18, 1e-12  ;;  %v310_v21 = vsel %vm308_vm4, %v309_v16, %v307_v19  ;;  %v298_v22 = vmul.f32 %v645_v17, %v294_v9 }
 0x114   : > { %v312_v23 = vmax.f32 %v310_v21, 1e-12 }
 0x115   : > { %646 = vrcp.f32 %v327_v20  ;;  %v300_v25 = vsel %vm299_vm5, %v294_v9, %v298_v22 }
 0x116   : > { %648 = vrcp.f32 %v312_v23  ;;  %v303_v26 = vsel %vm301_vm6, %v302_v24, %v300_v25 }
 0x117   : > { %v311_v27 = vmax.f32 %v303_v26, 1e-12 }
 0x119   : > { %650 = vrcp.f32 %v311_v27 }
 0x122   : > { %v647_v28 = vpop.eup %646 }
 0x123   : > { %v649_v29 = vpop.eup %648  ;;  %v332_v30 = vmul.f32 %v647_v28, %v289_v0 }
 0x124   : > { %v331_v31 = vmul.f32 %v649_v29, %v288_v1 }
 0x125   : > { %v410_v32 = vmul.f32 %v332_v30, %v332_v30 }
 0x126   : > { %v651_v33 = vpop.eup %650  ;;  %551 = vmatpush3.xpose.msra.mxu0 %v331_v31 }
 0x127   : > { %411 = vadd.xlane.f32.xlu1 %v410_v32  ;;  %552 = vmatprep.subr.mxu0 %v813_v6  ;;  %v330_v34 = vmul.f32 %v651_v33, %v287_v2 }
 0x12a   : > { %553 = vmatpush3.xpose.msra.mxu0 %v330_v34 }
 0x12b   : > { %418 = vadd.xlane.f32.xlu1 %v417_v36 }
 0x12d   : > { %555 = vmatmul.mubr.f32.vlgmr.msra.gmra.mxu0 %v332_v30 }
 0x1b0   : > { %v412_v43 = vpop.xlane.xlu1 %411 }
 0x1b1   : > { %v413_v44 = vmul.f32 2.0, %v412_v43 }
 0x1b3   : > { %v414_v45 = vmul.f32 1.442695, %v413_v44 }
 0x1b4   : > { %v419_v49 = vpop.xlane.xlu1 %418 }
 0x1b5   : > { %v420_v50 = vmul.f32 2.0, %v419_v49 }
 0x1ed   : > { %v399_v37 = vpop.f32.mrf.mxu0 }
 0x1ee   : > { %v403_v38 = vmul.f32 2.0, %v399_v37 }
 0x1ef   : > { %v556_v39 = vpop.f32.mrf.mxu0 }
 0x1f0   : > { %v404_v40 = vmul.f32 1.442695, %v403_v38 }
 0x1f2   : > { %652 = vpow2.f32 %v404_v40 }
 0x1f3   : > { %654 = vpow2.f32 %v414_v45 }
 0x1ff   : > { %v653_v41 = vpop.eup %652 }
 0x200   : > { %v407_v42 = vsel %vm406_vm7, %v653_v41, 0.0  ;;  %v655_v46 = vpop.eup %654 }
 0x201   : > { %408 = vadd.xlane.f32.xlu0 %v407_v42 }
 0x28a   : > { %v409_v47 = vpop.xlane.xlu0 %408 }
 0x28b   : > { %v416_v48 = vsub.f32 %v409_v47, %v655_v46 }
 0x28d   : > { %656 = vlog2.f32 %v416_v48 }
 0x29a   : > { %v657_v51 = vpop.eup %656 }
 0x29b   : > { %v422_v52 = vmul.f32 0.6931472, %v657_v51 }
 0x29d   : > { %v423_v53 = vsub.f32 %v422_v52, %v420_v50 }
 0x29f   : > { %425 = vst.msk [vmem:[%s286_s8] sm:$0xff] %vm424_vm8, %v423_v53 }
 0x2a0 PF: > { %p14_p3 = scmp.ge.s32.totalorder %s871_s19, 4   ;;  %s1082_s12 = smov %s786_s13 }
 0x2a1   : > { %s1083_s13 = smov %s790_s14  ;;  %s1084_s14 = smov %s989_s30 }
 0x2a2   : > { %s1085_s15 = smov %s798_s16  ;;  %s1086_s16 = smov %s802_s17 }
 0x2a3   : > { %s1087_s17 = smov %s882_s22  ;;  %s1088_s18 = smov %s871_s19 }
 0x2a4   :  { %16 = sbr.rel (!%p14_p3) target bundleno = 6 (0x6), region = 88 }
 0x2a9   :  { %445 = vsyncpa [#allocation3], 1 }
 0x2aa   :  { %447 = vsyncpa [#allocation3 + $0x1], 1 }
 0x2ab   :  { %448 = vsyncpa [#allocation5], 1 }
 0x2ac   :  { %450 = vsyncpa [#allocation5 + $0x1], 1 }

</bundles_post_ra>
